<compile_context>
chip_gen: v6e
topology: v6e:2x2x1
jax: 0.10.0
libtpu: 0.0.40
codegen_flags: <defaults>
</compile_context>

<pallas_src>
import functools
import math

import numpy as np
import jax
import jax.numpy as jnp
from jax.experimental import pallas as pl
from jax.experimental.pallas import tpu as pltpu

EPS = 1e-12


def expert_kernel(x_ref, w_ref, p_ref, o_ref, *, n_valid, n_pad):
    # MXU matmul: feed native-dtype operands (bf16 stays bf16), f32 accumulate.
    y = jnp.dot(x_ref[...], w_ref[...], preferred_element_type=jnp.float32)

    p = p_ref[...].astype(jnp.float32)          # (3, n_pad): bias, gamma, beta
    y = y + p[0:1, :]                           # bias (zero in padded columns)

    # Dropout(p=0.0) is identity -> no-op.

    # LayerNorm over the *valid* N columns, all statistics in f32.
    if n_pad == n_valid:
        mean = jnp.mean(y, axis=-1, keepdims=True)
        c = y - mean
        var = jnp.mean(c * c, axis=-1, keepdims=True)
    else:
        # Padded columns of y are exactly 0 (zero weight cols + zero bias),
        # so the plain sum already equals the sum over valid columns.
        inv_n = jnp.float32(1.0 / n_valid)
        mean = jnp.sum(y, axis=-1, keepdims=True) * inv_n
        col = jax.lax.broadcasted_iota(jnp.int32, y.shape, dimension=1)
        c = jnp.where(col < n_valid, y - mean, 0.0)
        var = jnp.sum(c * c, axis=-1, keepdims=True) * inv_n

    y_norm = c * jax.lax.rsqrt(var + EPS)
    # gamma/beta padded with zeros -> padded output columns are exactly 0.
    o_ref[...] = (y_norm * p[1:2, :] + p[2:3, :]).astype(o_ref.dtype)


def expert_layer(x, w, b, gamma, beta, *, tile_m=256, out_dtype=None):
    """x: [M, K]; w: [K, N]; b/gamma/beta: [N].  Returns [M, N]."""
    M, K = x.shape
    Kw, N = w.shape
    assert K == Kw, "weight must be stored as [input_size, output_size]"
    out_dtype = out_dtype or x.dtype

    # --- padding / tiling choices ------------------------------------------
    # Lane-dense feature dim (multiple of 128).
    n_pad = ((N + 127) // 128) * 128
    # Sublane multiple depends on element width (f32:8, bf16:16, int8:32).
    sub = 8 * max(1, 4 // x.dtype.itemsize)
    # Large row tile, but a single grid step for small M.
    m_tile = min(tile_m, ((M + sub - 1) // sub) * sub)
    m_tile = ((m_tile + sub - 1) // sub) * sub
    m_pad = ((M + m_tile - 1) // m_tile) * m_tile
    grid_m = m_pad // m_tile

    # --- zero padding (exact no-ops for matmul + masked LN) ----------------
    x_p = jnp.pad(x, ((0, m_pad - M), (0, 0))) if m_pad != M else x
    w_p = jnp.pad(w, ((0, 0), (0, n_pad - N))) if n_pad != N else w
    params = jnp.zeros((3, n_pad), jnp.float32)
    params = params.at[0, :N].set(b.astype(jnp.float32))
    params = params.at[1, :N].set(gamma.astype(jnp.float32))
    params = params.at[2, :N].set(beta.astype(jnp.float32))

    kernel = functools.partial(expert_kernel, n_valid=N, n_pad=n_pad)

    # --- scheduler hint ------------------------------------------------------
    out_itemsize = np.dtype(out_dtype).itemsize
    bytes_accessed = (x_p.size * x_p.dtype.itemsize
                      + w_p.size * w_p.dtype.itemsize
                      + params.size * 4
                      + m_pad * n_pad * out_itemsize)
    cost = pl.CostEstimate(flops=int(2 * m_pad * K * n_pad),
                           transcendentals=0,
                           bytes_accessed=int(bytes_accessed))

    # --- VMEM budget: raise the scoped limit only if we actually need it ----
    vmem_needed = (2 * w_p.size * w_p.dtype.itemsize          # weight (dbl-buf)
                   + 2 * m_tile * K * x_p.dtype.itemsize       # x tiles
                   + 2 * m_tile * n_pad * out_itemsize         # out tiles
                   + 2 * params.size * 4                       # packed params
                   + m_tile * n_pad * 4                        # f32 intermediates
                   + (1 << 20))                                # slack
    cp_kwargs = dict(dimension_semantics=("parallel",))
    if vmem_needed > (32 << 20):
        cp_kwargs["vmem_limit_bytes"] = int(min(vmem_needed, 100 << 20))

    out = pl.pallas_call(
        kernel,
        out_shape=jax.ShapeDtypeStruct((m_pad, n_pad), out_dtype),
        grid_spec=pltpu.PrefetchScalarGridSpec(
            num_scalar_prefetch=0,
            grid=(grid_m,),
            in_specs=[
                pl.BlockSpec((m_tile, K), lambda i: (i, 0)),     # x row tile
                pl.BlockSpec((K, n_pad), lambda i: (0, 0)),      # full weight, VMEM-resident
                pl.BlockSpec((3, n_pad), lambda i: (0, 0)),      # packed bias/gamma/beta
            ],
            out_specs=pl.BlockSpec((m_tile, n_pad), lambda i: (i, 0)),
        ),
        compiler_params=pltpu.CompilerParams(**cp_kwargs),
        cost_estimate=cost,
    )(x_p, w_p, params)

    return out[:M, :N]


def expert_layer_ref(x, w, b, gamma, beta):
    y = x @ w + b
    mean = jnp.mean(y, axis=-1, keepdims=True)
    var = jnp.mean((y - mean) ** 2, axis=-1, keepdims=True)
    return (y - mean) / jnp.sqrt(var + EPS) * gamma + beta


if __name__ == "__main__":
    key = jax.random.PRNGKey(0)
    k_x, k_w, k_b = jax.random.split(key, 3)

    # Small shapes consistent with the module: rows=16 (batch*seq),
    # input_size=32, output_size=64.
    M, input_size, output_size = 16, 32, 64

    x = jax.random.normal(k_x, (M, input_size), dtype=jnp.float32)
    # Linear weight init per _init_weights: N(0, 0.02). Stored as [K, N].
    w = 0.02 * jax.random.normal(k_w, (input_size, output_size), dtype=jnp.float32)
    # Deterministic synthetic bias (nn.Linear default bias is kept by the module).
    b = 0.01 * jax.random.normal(k_b, (output_size,), dtype=jnp.float32)
    # LayerNorm defaults.
    gamma = jnp.ones((output_size,), dtype=jnp.float32)
    beta = jnp.zeros((output_size,), dtype=jnp.float32)

    out = expert_layer(x, w, b, gamma, beta)
    out = jax.block_until_ready(out)

    ref = expert_layer_ref(x, w, b, gamma, beta)
    assert out.shape == (M, output_size)
    assert jnp.allclose(out, ref, atol=1e-5, rtol=1e-5), "mismatch vs reference"

    print("KERNEL_OK")
</pallas_src>

<mosaic_0001>
module attributes {stable_mosaic.version = 11 : i64} {
  func.func @expert_kernel(%arg0: i32, %arg1: memref<16x32xf32, #tpu.memory_space<vmem>>, %arg2: memref<32x128xf32, #tpu.memory_space<vmem>>, %arg3: memref<3x128xf32, #tpu.memory_space<vmem>>, %arg4: memref<16x128xf32, #tpu.memory_space<vmem>>) attributes {dimension_semantics = [#tpu.dimension_semantics<parallel>], iteration_bounds = array<i64: 1>, scalar_prefetch = 0 : i64, scratch_operands = 0 : i64, tpu.core_type = #tpu.core_type<tc>, window_params = [{transform_indices = @transform_0, window_bounds = array<i64: 16, 32>}, {pipeline_mode = #tpu.pipeline_mode<synchronous>, transform_indices = @transform_1, window_bounds = array<i64: 32, 128>}, {pipeline_mode = #tpu.pipeline_mode<synchronous>, transform_indices = @transform_2, window_bounds = array<i64: 3, 128>}, {transform_indices = @transform_3, window_bounds = array<i64: 16, 128>}]} {
    %c0 = arith.constant 0 : index
    %c0_0 = arith.constant 0 : index
    %0 = vector.load %arg1[%c0, %c0_0] : memref<16x32xf32, #tpu.memory_space<vmem>>, vector<16x32xf32>
    %c0_1 = arith.constant 0 : index
    %c0_2 = arith.constant 0 : index
    %1 = vector.load %arg2[%c0_1, %c0_2] : memref<32x128xf32, #tpu.memory_space<vmem>>, vector<32x128xf32>
    %cst = arith.constant dense<0.000000e+00> : vector<16x128xf32>
    %2 = tpu.matmul %0, %1, %cst {dimension_numbers = #tpu.dot_dimension_numbers<[1], [0], [0], [1], [0, 0, 1, 1], [], []>} : vector<16x32xf32>, vector<32x128xf32>, vector<16x128xf32> -> vector<16x128xf32>
    %c0_3 = arith.constant 0 : index
    %c0_4 = arith.constant 0 : index
    %3 = vector.load %arg3[%c0_3, %c0_4] : memref<3x128xf32, #tpu.memory_space<vmem>>, vector<3x128xf32>
    %4 = vector.extract_strided_slice %3 {offsets = [0, 0], sizes = [1, 128], strides = [1, 1]} : vector<3x128xf32> to vector<1x128xf32>
    %5 = vector.broadcast %4 : vector<1x128xf32> to vector<16x128xf32>
    %6 = arith.addf %2, %5 : vector<16x128xf32>
    %cst_5 = arith.constant dense<0.000000e+00> : vector<16xf32>
    %7 = vector.multi_reduction <add>, %6, %cst_5 [1] : vector<16x128xf32> to vector<16xf32>
    %8 = vector.shape_cast %7 : vector<16xf32> to vector<16x1xf32>
    %cst_6 = arith.constant 1.562500e-02 : f32
    %9 = vector.broadcast %cst_6 : f32 to vector<16x1xf32>
    %10 = arith.mulf %8, %9 : vector<16x1xf32>
    %11 = tpu.iota {dimensions = array<i32: 1>} : vector<16x128xi32>
    %c64_i32 = arith.constant 64 : i32
    %12 = vector.broadcast %c64_i32 : i32 to vector<16x128xi32>
    %13 = arith.cmpi slt, %11, %12 : vector<16x128xi32>
    %14 = vector.broadcast %10 : vector<16x1xf32> to vector<16x128xf32>
    %15 = arith.subf %6, %14 : vector<16x128xf32>
    %cst_7 = arith.constant 0.000000e+00 : f32
    %16 = vector.broadcast %cst_7 : f32 to vector<16x128xf32>
    %17 = arith.select %13, %15, %16 : vector<16x128xi1>, vector<16x128xf32>
    %18 = arith.mulf %17, %17 : vector<16x128xf32>
    %cst_8 = arith.constant dense<0.000000e+00> : vector<16xf32>
    %19 = vector.multi_reduction <add>, %18, %cst_8 [1] : vector<16x128xf32> to vector<16xf32>
    %20 = vector.shape_cast %19 : vector<16xf32> to vector<16x1xf32>
    %cst_9 = arith.constant 1.562500e-02 : f32
    %21 = vector.broadcast %cst_9 : f32 to vector<16x1xf32>
    %22 = arith.mulf %20, %21 : vector<16x1xf32>
    %cst_10 = arith.constant 9.99999996E-13 : f32
    %23 = vector.broadcast %cst_10 : f32 to vector<16x1xf32>
    %24 = arith.addf %22, %23 : vector<16x1xf32>
    %25 = math.rsqrt %24 : vector<16x1xf32>
    %26 = vector.broadcast %25 : vector<16x1xf32> to vector<16x128xf32>
    %27 = arith.mulf %17, %26 : vector<16x128xf32>
    %28 = vector.extract_strided_slice %3 {offsets = [1, 0], sizes = [1, 128], strides = [1, 1]} : vector<3x128xf32> to vector<1x128xf32>
    %29 = vector.broadcast %28 : vector<1x128xf32> to vector<16x128xf32>
    %30 = arith.mulf %27, %29 : vector<16x128xf32>
    %31 = vector.extract_strided_slice %3 {offsets = [2, 0], sizes = [1, 128], strides = [1, 1]} : vector<3x128xf32> to vector<1x128xf32>
    %32 = vector.broadcast %31 : vector<1x128xf32> to vector<16x128xf32>
    %33 = arith.addf %30, %32 : vector<16x128xf32>
    %c0_11 = arith.constant 0 : index
    %c0_12 = arith.constant 0 : index
    %34 = vector.load %arg4[%c0_11, %c0_12] : memref<16x128xf32, #tpu.memory_space<vmem>>, vector<16x128xf32>
    tpu.vector_store %arg4[%c0_11, %c0_12], %33 {strides = array<i32>} : memref<16x128xf32, #tpu.memory_space<vmem>>, vector<16x128xf32>,
    return
  }
  func.func @transform_0(%arg0: i32) -> (i32, i32) {
    %c0_i32 = arith.constant 0 : i32
    %c0_i32_0 = arith.constant 0 : i32
    return %arg0, %c0_i32 : i32, i32
  }
  func.func @transform_1(%arg0: i32) -> (i32, i32) {
    %c0_i32 = arith.constant 0 : i32
    %c0_i32_0 = arith.constant 0 : i32
    %c0_i32_1 = arith.constant 0 : i32
    return %c0_i32, %c0_i32_0 : i32, i32
  }
  func.func @transform_2(%arg0: i32) -> (i32, i32) {
    %c0_i32 = arith.constant 0 : i32
    %c0_i32_0 = arith.constant 0 : i32
    %c0_i32_1 = arith.constant 0 : i32
    return %c0_i32, %c0_i32_0 : i32, i32
  }
  func.func @transform_3(%arg0: i32) -> (i32, i32) {
    %c0_i32 = arith.constant 0 : i32
    %c0_i32_0 = arith.constant 0 : i32
    return %arg0, %c0_i32 : i32, i32
  }
}

</mosaic_0001>

<bundles_post_ra>
// kernel: tpu_custom_call.1
= control target key start
LH: loop header
LB: loop body
LE: loop exit
PB: predicated region body
PF: predicated region fallthrough
CT: control target
= control target key end

     0   :  { %8 = vsyncpa [#allocation3], 0  ;;  %s370_s0 = inlined_call_operand.hbm [shape: f32[16,32], index: 0, kind: input, shape index: {}]   ;;  %s371_s1 = inlined_call_operand.hbm [shape: f32[32,128], index: 1, kind: input, shape index: {}]   ;;  %s372_s2 = inlined_call_operand.hbm [shape: f32[3,128], index: 2, kind: input, shape index: {}]   ;;  %s373_s3 = inlined_call_operand.hbm [shape: f32[16,128], index: 3, kind: output, shape index: {}]  }
   0x1   :  { %9 = vsyncpa [#allocation6], 0 }
   0x2   :  { %10 = vsyncpa [#allocation4], 0  ;;  %s321_s12 = smov [#allocation5]   ;;  %s322_s14 = smov [#allocation2]  }
   0x3   :  { %s28_s13 = sshll.u32 %s321_s12, 4  ;;  %s16_s15 = sshll.u32 %s322_s14, 4  ;;  %s29_s13 = int_to_ptr.vmem [resolvable:$true] %s28_s13  ;;  %s17_s15 = int_to_ptr.vmem [resolvable:$true] %s16_s15 }
   0x4   :  { %s243_s16 = scalar_lea.vmem %s29_s13, 512  ;;  %p248_p1 = scmp.lt.s32.totalorder %s29_s13, %s29_s13 }
   0x5   :  { %p244_p0 = scmp.ne.s32.totalorder %s29_s13, %s243_s16  ;;  %p249_p2 = scmp.lt.s32.totalorder %s243_s16, %s243_s16 }
   0x7   :  { %p250_p3 = por %p249_p2, %p248_p1 }
   0x9   :  { %p251_p4 = pnand %p250_p3, %p244_p0 }
   0xb   :  { %254 = shalt.err (!%p251_p4)
}
   0xc   :  { %s323_s17 = smov 128   ;;  %s324_s18 = smov 8  }
   0xd   :  { %34 = dma.hbm_to_vmem [thread:$0]  %s371_s1, 512, %s29_s13, [#allocation6], %s323_s17, %s323_s17, %s324_s18  }
   0xe   :  { %s263_s21 = scalar_lea.vmem %s17_s15, 256  ;;  %p268_p6 = scmp.lt.s32.totalorder %s17_s15, %s17_s15 }
   0xf   :  { %p264_p5 = scmp.ne.s32.totalorder %s17_s15, %s263_s21  ;;  %p269_p7 = scmp.lt.s32.totalorder %s263_s21, %s263_s21 }
  0x11   :  { %p270_p8 = por %p269_p7, %p268_p6 }
  0x13   :  { %p271_p9 = pnand %p270_p8, %p264_p5 }
  0x15   :  { %274 = shalt.err (!%p271_p9)
}
  0x16   :  { %22 = dma.hbm_to_vmem [thread:$0]  %s370_s0, 256, %s17_s15, [#allocation3], %s323_s17, %s323_s17, %s324_s18  }
  0x17   :  { %s325_s24 = smov [#allocation7]  }
  0x18   :  { %s41_s25 = sshll.u32 %s325_s24, 4  ;;  %s42_s25 = int_to_ptr.vmem [resolvable:$true] %s41_s25 }
  0x19   :  { %s283_s26 = scalar_lea.vmem %s42_s25, 64  ;;  %p288_p11 = scmp.lt.s32.totalorder %s42_s25, %s42_s25 }
  0x1a   :  { %p284_p10 = scmp.ne.s32.totalorder %s42_s25, %s283_s26  ;;  %p289_p12 = scmp.lt.s32.totalorder %s283_s26, %s283_s26 }
  0x1c   :  { %p290_p13 = por %p289_p12, %p288_p11 }
  0x1e   :  { %p291_p0 = pnand %p290_p13, %p284_p10 }
  0x20   :  { %294 = shalt.err (!%p291_p0)
}
  0x21   :  { %44 = dma.hbm_to_vmem [thread:$0]  %s372_s2, 64, %s42_s25, [#allocation6]  }
  0x22   :  { %315 = dma.done.wait [#allocation3], 256  }
  0x23   :  { %316 = vsyncadd [#allocation3], 4294967040 }
  0x24   :  { %317 = dma.done.wait [#allocation6], 576  }
  0x25   :  { %318 = vsyncadd [#allocation6], 4294966720  ;;  %vm65_vm0 = vcmask 261120   ;;  %v59_v0 = vld [vmem:[#allocation5 + $0x18] sm:$0xff]  ;;  %v58_v1 = vld [vmem:[#allocation5 + $0x10] sm:$0xff]  ;;  %v61_v6 = vlaneseq  ;;  %s326_s0 = smov [#allocation8]  }
  0x26   :  { %214 = vmatprep.subr.mxu0 %v59_v0  ;;  %v54_v2 = vld [vmem:[#allocation2] sm:$0xff]  ;;  %v57_v3 = vld [vmem:[#allocation5 + $0x8] sm:$0xff]  ;;  %v56_v4 = vld [vmem:[#allocation5] sm:$0xff]  ;;  %s193_s2 = sshll.u32 %s326_s0, 4  ;;  %s194_s2 = int_to_ptr.vmem [resolvable:$true] %s193_s2 }
  0x27   :  { %215 = vmatpush3.msra.mxu0 %v59_v0  ;;  %222 = vmatprep.mubr.msk.f32.mxu0 %vm65_vm0, %v54_v2  ;;  %v55_v5 = vld [vmem:[#allocation2 + $0x8] sm:$0xff]  ;;  %v62_v7 = vshrl.u32 %v61_v6, 7  ;;  %v60_v9 = vld [vmem:[#allocation7] sm:$0x7]  ;;  %v154_v15 = vand.u32 127, %v61_v6  ;;  %s295_s28 = scalar_lea.vmem %s194_s2, 256  ;;  %p300_p2 = scmp.lt.s32.totalorder %s194_s2, %s194_s2 }
  0x28   :  { %216 = vmatprep.subr.mxu0 %v58_v1  ;;  %p296_p1 = scmp.ne.s32.totalorder %s194_s2, %s295_s28  ;;  %p301_p3 = scmp.lt.s32.totalorder %s295_s28, %s295_s28 }
  0x29   :  { %217 = vmatpush3.msra.mxu0 %v58_v1  ;;  %v63_v8 = vsub.s32 0, %v62_v7  ;;  %vm155_vm1 = vcmp.lt.s32.totalorder %v154_v15, 64  ;;  %v176_v32 = vsub.s32 1, %v62_v7  ;;  %v182_v33 = vsub.s32 2, %v62_v7 }
  0x2a   :  { %218 = vmatprep.subr.mxu0 %v57_v3  ;;  %p302_p4 = por %p301_p3, %p300_p2 }
  0x2b   :  { %219 = vmatpush3.msra.mxu0 %v57_v3  ;;  %v64_v11 = vrot.slane %v60_v9, %v63_v8  ;;  %v177_v34 = vrot.slane %v60_v9, %v176_v32  ;;  %v183_v36 = vrot.slane %v60_v9, %v182_v33 }
  0x2c   :  { %220 = vmatprep.subr.mxu0 %v56_v4  ;;  %p303_p5 = pnand %p302_p4, %p296_p1 }
  0x2d   :  { %221 = vmatpush3.msra.mxu0 %v56_v4 }
  0x2e   :  { %223 = vmatmul.mubr.msk.f32.vlgmr.msra.gmra.mxu0 %vm65_vm0, %v55_v5 }
  0xee   :  { %v224_v10 = vpop.f32.mrf.mxu0 }
  0xef   :  { %v144_v14 = vadd.f32 %v224_v10, %v64_v11 }
  0xf0   :  { %v138_v12 = vpop.f32.mrf.mxu0 }
  0xf1   :  { %v139_v13 = vadd.f32 %v138_v12, %v64_v11 }
  0xf3   :  { %147 = vadd.xlane.f32.xlu0 %v139_v13 }
  0xf7   :  { %149 = vadd.xlane.f32.xlu0 %v144_v14 }
 0x17c   :  { %v148_v16 = vpop.xlane.xlu0 %147 }
 0x17d   :  { %v151_v17 = vmul.f32 0.015625, %v148_v16 }
 0x17f   :  { %v156_v18 = vsub.f32 %v139_v13, %v151_v17 }
 0x180   :  { %v150_v19 = vpop.xlane.xlu0 %149 }
 0x181   :  { %v152_v20 = vmul.f32 0.015625, %v150_v19  ;;  %v158_v21 = vsel %vm155_vm1, %v156_v18, 0.0 }
 0x182   :  { %v160_v22 = vmul.f32 %v158_v21, %v158_v21 }
 0x183   :  { %v157_v23 = vsub.f32 %v144_v14, %v152_v20 }
 0x184   :  { %162 = vadd.xlane.f32.xlu1 %v160_v22 }
 0x185   :  { %v159_v24 = vsel %vm155_vm1, %v157_v23, 0.0 }
 0x186   :  { %v161_v25 = vmul.f32 %v159_v24, %v159_v24 }
 0x188   :  { %164 = vadd.xlane.f32.xlu1 %v161_v25 }
 0x20d   :  { %v163_v26 = vpop.xlane.xlu1 %162 }
 0x20e   :  { %v166_v27 = vmul.f32 0.015625, %v163_v26 }
 0x210   :  { %v168_v28 = vadd.f32 1e-12, %v166_v27 }
 0x211   :  { %v165_v29 = vpop.xlane.xlu1 %164 }
 0x212   :  { %231 = vrsqrt.f32 %v168_v28  ;;  %v167_v30 = vmul.f32 0.015625, %v165_v29 }
 0x214   :  { %v169_v31 = vadd.f32 1e-12, %v167_v30 }
 0x216   :  { %233 = vrsqrt.f32 %v169_v31 }
 0x21f   :  { %v232_v35 = vpop.eup %231 }
 0x220   :  { %v172_v37 = vmul.f32 %v232_v35, %v158_v21 }
 0x222   :  { %v178_v38 = vmul.f32 %v177_v34, %v172_v37 }
 0x223   :  { %v234_v39 = vpop.eup %233 }
 0x224   :  { %v173_v40 = vmul.f32 %v234_v39, %v159_v24  ;;  %v184_v41 = vadd.f32 %v183_v36, %v178_v38 }
 0x226   :  { %v179_v42 = vmul.f32 %v177_v34, %v173_v40  ;;  %186 = vst [vmem:[#allocation8] sm:$0xff] %v184_v41 }
 0x228   :  { %v185_v43 = vadd.f32 %v183_v36, %v179_v42 }
 0x22a   :  { %187 = vst [vmem:[#allocation8 + $0x8] sm:$0xff] %v185_v43 }
 0x22b   :  { %306 = shalt.err (!%p303_p5)
}
 0x22c   :  { %199 = dma.vmem_to_hbm [thread:$0]  %s194_s2, 256, %s373_s3, [#allocation4], %s323_s17, %s323_s17, %s324_s18  }
 0x22d   :  { %319 = dma.done.wait [#allocation4], 256  }
 0x22e   :  { %320 = vsyncadd [#allocation4], 4294967040 }
 0x22f   :  { %203 = vsyncpa [#allocation3], 1 }
 0x230   :  { %204 = vsyncpa [#allocation6], 1 }
 0x231   :  { %205 = vsyncpa [#allocation4], 1 }

</bundles_post_ra>
